<compile_context>
chip_gen: v6e
topology: v6e:2x2x1
jax: 0.10.0
libtpu: 0.0.40
codegen_flags: <defaults>
</compile_context>

<pallas_src>
import functools

import jax
import jax.numpy as jnp
import numpy as np
from jax.experimental import pallas as pl
from jax.experimental.pallas import tpu as pltpu


def _fit_atan_poly(degree_u=7):
    """Least-squares fit of arctan(t)/t ~= sum_k c_k * (t^2)^k on t in [0, 1]."""
    t = np.linspace(0.0, 1.0, 4001)
    g = np.ones_like(t)
    nz = t > 0
    g[nz] = np.arctan(t[nz]) / t[nz]
    u = t * t
    basis = np.stack([u ** k for k in range(degree_u + 1)], axis=1)
    coeffs, *_ = np.linalg.lstsq(basis, g, rcond=None)
    max_err = np.max(np.abs(t * (basis @ coeffs) - np.arctan(t)))
    assert max_err < 1e-5, f"atan polynomial fit too inaccurate: {max_err}"
    return [float(c) for c in coeffs]


_ATAN_COEFFS = _fit_atan_poly()


def _bf16_tanh_supported():
    """bf16 EUP/VPU exists on v6e / v7x; keep f32 on v5e and older chips."""
    try:
        kind = jax.devices()[0].device_kind.lower()
    except Exception:
        return False
    return any(tag in kind for tag in ("v6", "v7", "7x"))


def _atan2_fast(y, x):
    """atan2(y, x): approx EUP reciprocal + VALU Newton for the divide, fitted
    odd polynomial (pure VALU) for arctan, jnp.where quadrant fixup."""
    ax = jnp.abs(x)
    ay = jnp.abs(y)
    num = jnp.minimum(ay, ax)
    den = jnp.maximum(ay, ax)
    den = jnp.where(den == 0.0, 1.0, den)        # atan2(0, 0) -> 0 (pad rows)
    inv = pl.reciprocal(den, approx=True)        # EUP, approximate
    inv = inv * (2.0 - den * inv)                # Newton #1 (VALU)
    inv = inv * (2.0 - den * inv)                # Newton #2 (VALU)
    t = num * inv                                # ratio in [0, 1]
    u = t * t
    g = _ATAN_COEFFS[-1]
    for c in reversed(_ATAN_COEFFS[:-1]):        # Horner, all VALU
        g = g * u + c
    r = t * g                                    # arctan(t) on [0, 1]
    r = jnp.where(ay > ax, float(0.5 * np.pi) - r, r)
    r = jnp.where(x < 0.0, float(np.pi) - r, r)
    return jnp.where(y < 0.0, -r, r)


def polarnet_kernel(x_ref, w1_ref, b1_ref, w2_ref, b2_ref, o_ref, *, bf16_tanh):
    # polar transform, lane-dense: each row is (1, TN)
    x0 = x_ref[0:1, :]                                  # (1, TN)
    x1 = x_ref[1:2, :]                                  # (1, TN)
    r = jnp.sqrt(x0 * x0 + x1 * x1)                     # (1, TN)
    a = _atan2_fast(x1, x0)                             # (1, TN)

    # fc1: [r, a] @ W1^T + b1 with K == 2 -> two broadcasted rank-1 updates
    # (avoids a padded, wasteful MXU matmul). Result is (H, TN), lane-dense.
    h = w1_ref[:, 0:1] * r + w1_ref[:, 1:2] * a + b1_ref[...]   # (H, TN)

    # fc2: Tanh is the dominant EUP work; bf16 roughly doubles EUP throughput
    # on v6e/v7x. fc3 reduce and the sigmoid stay in f32.
    if bf16_tanh:
        t = jnp.tanh(h.astype(jnp.bfloat16)).astype(jnp.float32)
    else:
        t = jnp.tanh(h)                                 # (H, TN)

    # fc3: output dim == 1 -> sublane reduction against W2 (XLU, off the EUP)
    z = jnp.sum(t * w2_ref[...], axis=0, keepdims=True) + b2_ref[0, 0]   # (1, TN)

    # fc4: Sigmoid as a single tanh (one EUP op instead of exp + divide)
    o_ref[...] = 0.5 * (jnp.tanh(0.5 * z) + 1.0)


def polarnet_forward(x, w1, b1, w2, b2, *, tile_n=4096, bf16_tanh=None):
    """x: (N, 2); w1: (H, 2); b1: (H, 1); w2: (H, 1); b2: (1, 1) -> (N, 1)."""
    assert tile_n % 128 == 0, "tile_n must be a multiple of 128 (lane width)"
    n = x.shape[0]
    hdim = w1.shape[0]
    if bf16_tanh is None:
        bf16_tanh = _bf16_tanh_supported()

    # Big tiles amortize per-step pipeline/DMA overhead; shrink so the grid
    # keeps >= 2 parallel steps whenever the batch allows it (v7x megacore).
    tile = min(tile_n, max(128, 128 * pl.cdiv(pl.cdiv(n, 2), 128)))
    n_pad = tile * pl.cdiv(n, tile)

    # Pad batch to a tile multiple (pad rows: sqrt(0)=0, atan2(0,0)=0 -> finite,
    # sliced off afterwards), then go batch-on-lanes. Under jit with
    # allow_input_fusion on this operand, XLA can fold the transpose+pad into
    # the pallas_call operand instead of materializing a separate HBM copy.
    x_t = jnp.pad(x.astype(jnp.float32).T, ((0, 0), (0, n_pad - n)))   # (2, Np)

    kernel = functools.partial(polarnet_kernel, bf16_tanh=bool(bf16_tanh))
    out = pl.pallas_call(
        kernel,
        out_shape=jax.ShapeDtypeStruct((1, n_pad), jnp.float32),
        grid=(n_pad // tile,),
        in_specs=[
            pl.BlockSpec((2, tile), lambda i: (0, i)),       # x tile (lane-dense)
            pl.BlockSpec((hdim, 2), lambda i: (0, 0)),       # w1 (resident)
            pl.BlockSpec((hdim, 1), lambda i: (0, 0)),       # b1 (resident)
            pl.BlockSpec((hdim, 1), lambda i: (0, 0)),       # w2 (resident)
            pl.BlockSpec(memory_space=pltpu.MemorySpace.SMEM),   # b2 scalar
        ],
        out_specs=pl.BlockSpec((1, tile), lambda i: (0, i)),     # lane-dense store
        compiler_params=pltpu.CompilerParams(
            dimension_semantics=("parallel",),
            allow_input_fusion=[True, False, False, False, False],
            vmem_limit_bytes=32 * 1024 * 1024,
        ),
    )(x_t, w1, b1, w2, b2)

    return out[0, :n].reshape(n, 1)


def reference_forward(x, w1, b1, w2, b2):
    r = jnp.sqrt(x[:, 0] ** 2 + x[:, 1] ** 2)
    a = jnp.arctan2(x[:, 1], x[:, 0])
    p = jnp.stack([r, a], axis=1)                 # (N, 2)
    hid = jnp.tanh(p @ w1.T + b1[:, 0])           # (N, H)
    z = hid @ w2 + b2[0, 0]                       # (N, 1)
    return jax.nn.sigmoid(z)


# TODO(synk): the module also caches self.temp1 = Tanh(fc1(...)) as a stateful
# attribute; that side effect is not part of the returned output and is not
# reproduced here.

if __name__ == "__main__":
    num_hid = 32
    batch = 97   # matches the module's temp1 hint; exercises the padding path

    key = jax.random.PRNGKey(0)
    kx, kx2, k1, k2, k3, k4 = jax.random.split(key, 6)

    # deterministic init mimicking nn.Linear defaults: U(-1/sqrt(fan_in), 1/sqrt(fan_in))
    bnd1 = 1.0 / np.sqrt(2.0)
    bnd2 = 1.0 / np.sqrt(num_hid)
    w1 = jax.random.uniform(k1, (num_hid, 2), jnp.float32, -bnd1, bnd1)   # fc1.weight
    b1 = jax.random.uniform(k2, (num_hid, 1), jnp.float32, -bnd1, bnd1)   # fc1.bias
    w2 = jax.random.uniform(k3, (num_hid, 1), jnp.float32, -bnd2, bnd2)   # fc3.weight^T
    b2 = jax.random.uniform(k4, (1, 1), jnp.float32, -bnd2, bnd2)         # fc3.bias

    forward = jax.jit(polarnet_forward, static_argnames=("tile_n", "bf16_tanh"))
    # bf16 tanh (v6e/v7x) has ~3 significant decimal digits; loosen slightly.
    tol = 2e-3 if _bf16_tanh_supported() else 1e-3

    # small batch (97): single tile, exercises the padding path
    x = jax.random.normal(kx, (batch, 2), jnp.float32)
    out = jax.block_until_ready(forward(x, w1, b1, w2, b2))
    ref = reference_forward(x, w1, b1, w2, b2)
    assert out.shape == (batch, 1)
    assert jnp.allclose(out, ref, rtol=tol, atol=tol)

    # larger batch: exercises the full 4096-lane tile and the grid >= 2 path
    x2 = jax.random.normal(kx2, (9000, 2), jnp.float32)
    out2 = jax.block_until_ready(forward(x2, w1, b1, w2, b2))
    ref2 = reference_forward(x2, w1, b1, w2, b2)
    assert out2.shape == (9000, 1)
    assert jnp.allclose(out2, ref2, rtol=tol, atol=tol)

    print("KERNEL_OK")
</pallas_src>

<mosaic_0001>
module attributes {stable_mosaic.version = 11 : i64} {
  func.func @polarnet_kernel(%arg0: i32, %arg1: memref<2x128xf32, #tpu.memory_space<vmem>>, %arg2: memref<32x2xf32, #tpu.memory_space<vmem>>, %arg3: memref<32x1xf32, #tpu.memory_space<vmem>>, %arg4: memref<32x1xf32, #tpu.memory_space<vmem>>, %arg5: memref<1x1xf32, #tpu.memory_space<smem>>, %arg6: memref<1x128xf32, #tpu.memory_space<vmem>>) attributes {dimension_semantics = [#tpu.dimension_semantics<parallel>], iteration_bounds = array<i64: 1>, scalar_prefetch = 0 : i64, scratch_operands = 0 : i64, tpu.core_type = #tpu.core_type<tc>, window_params = [{transform_indices = @transform_0, window_bounds = array<i64: 2, 128>}, {pipeline_mode = #tpu.pipeline_mode<synchronous>, transform_indices = @transform_1, window_bounds = array<i64: 32, 2>}, {pipeline_mode = #tpu.pipeline_mode<synchronous>, transform_indices = @transform_2, window_bounds = array<i64: 32, 1>}, {pipeline_mode = #tpu.pipeline_mode<synchronous>, transform_indices = @transform_3, window_bounds = array<i64: 32, 1>}, {transform_indices = @transform_4, window_bounds = array<i64: 1, 1>}, {transform_indices = @transform_5, window_bounds = array<i64: 1, 128>}]} {
    %c0 = arith.constant 0 : index
    %c0_0 = arith.constant 0 : index
    %0 = vector.load %arg1[%c0, %c0_0] : memref<2x128xf32, #tpu.memory_space<vmem>>, vector<1x128xf32>
    %c1 = arith.constant 1 : index
    %c0_1 = arith.constant 0 : index
    %1 = vector.load %arg1[%c1, %c0_1] : memref<2x128xf32, #tpu.memory_space<vmem>>, vector<1x128xf32>
    %2 = arith.mulf %0, %0 : vector<1x128xf32>
    %3 = arith.mulf %1, %1 : vector<1x128xf32>
    %4 = arith.addf %2, %3 : vector<1x128xf32>
    %5 = math.sqrt %4 : vector<1x128xf32>
    %6 = math.absf %0 : vector<1x128xf32>
    %7 = math.absf %1 : vector<1x128xf32>
    %8 = arith.minimumf %7, %6 : vector<1x128xf32>
    %9 = arith.maximumf %7, %6 : vector<1x128xf32>
    %cst = arith.constant 0.000000e+00 : f32
    %10 = vector.broadcast %cst : f32 to vector<1x128xf32>
    %11 = arith.cmpf oeq, %9, %10 : vector<1x128xf32>
    %cst_2 = arith.constant 1.000000e+00 : f32
    %12 = vector.broadcast %cst_2 : f32 to vector<1x128xf32>
    %13 = arith.select %11, %12, %9 : vector<1x128xi1>, vector<1x128xf32>
    %14 = tpu.reciprocal %13 {approx = true} : vector<1x128xf32> -> vector<1x128xf32>
    %15 = arith.mulf %13, %14 : vector<1x128xf32>
    %cst_3 = arith.constant 2.000000e+00 : f32
    %16 = vector.broadcast %cst_3 : f32 to vector<1x128xf32>
    %17 = arith.subf %16, %15 : vector<1x128xf32>
    %18 = arith.mulf %14, %17 : vector<1x128xf32>
    %19 = arith.mulf %13, %18 : vector<1x128xf32>
    %cst_4 = arith.constant 2.000000e+00 : f32
    %20 = vector.broadcast %cst_4 : f32 to vector<1x128xf32>
    %21 = arith.subf %20, %19 : vector<1x128xf32>
    %22 = arith.mulf %18, %21 : vector<1x128xf32>
    %23 = arith.mulf %8, %22 : vector<1x128xf32>
    %24 = arith.mulf %23, %23 : vector<1x128xf32>
    %cst_5 = arith.constant -5.018730e-03 : f32
    %25 = vector.broadcast %cst_5 : f32 to vector<1x128xf32>
    %26 = arith.mulf %25, %24 : vector<1x128xf32>
    %cst_6 = arith.constant 0.0253244452 : f32
    %27 = vector.broadcast %cst_6 : f32 to vector<1x128xf32>
    %28 = arith.addf %26, %27 : vector<1x128xf32>
    %29 = arith.mulf %28, %24 : vector<1x128xf32>
    %cst_7 = arith.constant -0.0608657263 : f32
    %30 = vector.broadcast %cst_7 : f32 to vector<1x128xf32>
    %31 = arith.addf %29, %30 : vector<1x128xf32>
    %32 = arith.mulf %31, %24 : vector<1x128xf32>
    %cst_8 = arith.constant 0.100016899 : f32
    %33 = vector.broadcast %cst_8 : f32 to vector<1x128xf32>
    %34 = arith.addf %32, %33 : vector<1x128xf32>
    %35 = arith.mulf %34, %24 : vector<1x128xf32>
    %cst_9 = arith.constant -0.140476689 : f32
    %36 = vector.broadcast %cst_9 : f32 to vector<1x128xf32>
    %37 = arith.addf %35, %36 : vector<1x128xf32>
    %38 = arith.mulf %37, %24 : vector<1x128xf32>
    %cst_10 = arith.constant 0.199740082 : f32
    %39 = vector.broadcast %cst_10 : f32 to vector<1x128xf32>
    %40 = arith.addf %38, %39 : vector<1x128xf32>
    %41 = arith.mulf %40, %24 : vector<1x128xf32>
    %cst_11 = arith.constant -0.333322316 : f32
    %42 = vector.broadcast %cst_11 : f32 to vector<1x128xf32>
    %43 = arith.addf %41, %42 : vector<1x128xf32>
    %44 = arith.mulf %43, %24 : vector<1x128xf32>
    %cst_12 = arith.constant 0.99999994 : f32
    %45 = vector.broadcast %cst_12 : f32 to vector<1x128xf32>
    %46 = arith.addf %44, %45 : vector<1x128xf32>
    %47 = arith.mulf %23, %46 : vector<1x128xf32>
    %48 = arith.cmpf ogt, %7, %6 : vector<1x128xf32>
    %cst_13 = arith.constant 1.57079637 : f32
    %49 = vector.broadcast %cst_13 : f32 to vector<1x128xf32>
    %50 = arith.subf %49, %47 : vector<1x128xf32>
    %51 = arith.select %48, %50, %47 : vector<1x128xi1>, vector<1x128xf32>
    %cst_14 = arith.constant 0.000000e+00 : f32
    %52 = vector.broadcast %cst_14 : f32 to vector<1x128xf32>
    %53 = arith.cmpf olt, %0, %52 : vector<1x128xf32>
    %cst_15 = arith.constant 3.14159274 : f32
    %54 = vector.broadcast %cst_15 : f32 to vector<1x128xf32>
    %55 = arith.subf %54, %51 : vector<1x128xf32>
    %56 = arith.select %53, %55, %51 : vector<1x128xi1>, vector<1x128xf32>
    %cst_16 = arith.constant 0.000000e+00 : f32
    %57 = vector.broadcast %cst_16 : f32 to vector<1x128xf32>
    %58 = arith.cmpf olt, %1, %57 : vector<1x128xf32>
    %cst_17 = arith.constant 0.000000e+00 : f32
    %59 = vector.broadcast %cst_17 : f32 to vector<1x128xf32>
    %60 = arith.subf %59, %56 : vector<1x128xf32>
    %61 = arith.select %58, %60, %56 : vector<1x128xi1>, vector<1x128xf32>
    %c0_18 = arith.constant 0 : index
    %c0_19 = arith.constant 0 : index
    %62 = vector.load %arg2[%c0_18, %c0_19] : memref<32x2xf32, #tpu.memory_space<vmem>>, vector<32x1xf32>
    %63 = vector.broadcast %62 : vector<32x1xf32> to vector<32x128xf32>
    %64 = vector.broadcast %5 : vector<1x128xf32> to vector<32x128xf32>
    %65 = arith.mulf %63, %64 : vector<32x128xf32>
    %c0_20 = arith.constant 0 : index
    %c1_21 = arith.constant 1 : index
    %66 = vector.load %arg2[%c0_20, %c1_21] : memref<32x2xf32, #tpu.memory_space<vmem>>, vector<32x1xf32>
    %67 = vector.broadcast %66 : vector<32x1xf32> to vector<32x128xf32>
    %68 = vector.broadcast %61 : vector<1x128xf32> to vector<32x128xf32>
    %69 = arith.mulf %67, %68 : vector<32x128xf32>
    %70 = arith.addf %65, %69 : vector<32x128xf32>
    %c0_22 = arith.constant 0 : index
    %c0_23 = arith.constant 0 : index
    %71 = vector.load %arg3[%c0_22, %c0_23] : memref<32x1xf32, #tpu.memory_space<vmem>>, vector<32x1xf32>
    %72 = vector.broadcast %71 : vector<32x1xf32> to vector<32x128xf32>
    %73 = arith.addf %70, %72 : vector<32x128xf32>
    %74 = math.tanh %73 : vector<32x128xf32>
    %c0_24 = arith.constant 0 : index
    %c0_25 = arith.constant 0 : index
    %75 = vector.load %arg4[%c0_24, %c0_25] : memref<32x1xf32, #tpu.memory_space<vmem>>, vector<32x1xf32>
    %76 = vector.broadcast %75 : vector<32x1xf32> to vector<32x128xf32>
    %77 = arith.mulf %74, %76 : vector<32x128xf32>
    %cst_26 = arith.constant dense<0.000000e+00> : vector<128xf32>
    %78 = vector.multi_reduction <add>, %77, %cst_26 [0] : vector<32x128xf32> to vector<128xf32>
    %79 = vector.shape_cast %78 : vector<128xf32> to vector<1x128xf32>
    %c0_27 = arith.constant 0 : index
    %c0_28 = arith.constant 0 : index
    %80 = memref.load %arg5[%c0_27, %c0_28] : memref<1x1xf32, #tpu.memory_space<smem>>
    %81 = vector.broadcast %80 : f32 to vector<1x128xf32>
    %82 = arith.addf %79, %81 : vector<1x128xf32>
    %cst_29 = arith.constant 5.000000e-01 : f32
    %83 = vector.broadcast %cst_29 : f32 to vector<1x128xf32>
    %84 = arith.mulf %83, %82 : vector<1x128xf32>
    %85 = math.tanh %84 : vector<1x128xf32>
    %cst_30 = arith.constant 1.000000e+00 : f32
    %86 = vector.broadcast %cst_30 : f32 to vector<1x128xf32>
    %87 = arith.addf %85, %86 : vector<1x128xf32>
    %cst_31 = arith.constant 5.000000e-01 : f32
    %88 = vector.broadcast %cst_31 : f32 to vector<1x128xf32>
    %89 = arith.mulf %88, %87 : vector<1x128xf32>
    %c0_32 = arith.constant 0 : index
    %c0_33 = arith.constant 0 : index
    %90 = vector.load %arg6[%c0_32, %c0_33] : memref<1x128xf32, #tpu.memory_space<vmem>>, vector<1x128xf32>
    tpu.vector_store %arg6[%c0_32, %c0_33], %89 {strides = array<i32>} : memref<1x128xf32, #tpu.memory_space<vmem>>, vector<1x128xf32>,
    return
  }
  func.func @transform_0(%arg0: i32) -> (i32, i32) {
    %c0_i32 = arith.constant 0 : i32
    %c0_i32_0 = arith.constant 0 : i32
    return %c0_i32, %arg0 : i32, i32
  }
  func.func @transform_1(%arg0: i32) -> (i32, i32) {
    %c0_i32 = arith.constant 0 : i32
    %c0_i32_0 = arith.constant 0 : i32
    %c0_i32_1 = arith.constant 0 : i32
    return %c0_i32, %c0_i32_0 : i32, i32
  }
  func.func @transform_2(%arg0: i32) -> (i32, i32) {
    %c0_i32 = arith.constant 0 : i32
    %c0_i32_0 = arith.constant 0 : i32
    %c0_i32_1 = arith.constant 0 : i32
    return %c0_i32, %c0_i32_0 : i32, i32
  }
  func.func @transform_3(%arg0: i32) -> (i32, i32) {
    %c0_i32 = arith.constant 0 : i32
    %c0_i32_0 = arith.constant 0 : i32
    %c0_i32_1 = arith.constant 0 : i32
    return %c0_i32, %c0_i32_0 : i32, i32
  }
  func.func @transform_4(%arg0: i32) -> (i32, i32) {
    %c0_i32 = arith.constant 0 : i32
    %c0_i32_0 = arith.constant 0 : i32
    %c0_i32_1 = arith.constant 0 : i32
    return %c0_i32, %c0_i32_0 : i32, i32
  }
  func.func @transform_5(%arg0: i32) -> (i32, i32) {
    %c0_i32 = arith.constant 0 : i32
    %c0_i32_0 = arith.constant 0 : i32
    return %c0_i32, %arg0 : i32, i32
  }
}

</mosaic_0001>

<bundles_post_ra>
// kernel: polarnet_forward.2
= control target key start
LH: loop header
LB: loop body
LE: loop exit
PB: predicated region body
PF: predicated region fallthrough
CT: control target
= control target key end

     0   :  { %s338_s0 = inlined_call_operand.vmem [shape: f32[32,2], index: 0, kind: input, shape index: {}]   ;;  %s339_s1 = inlined_call_operand.vmem [shape: f32[32,1], index: 1, kind: input, shape index: {}]   ;;  %s340_s2 = inlined_call_operand.vmem [shape: f32[32,1], index: 2, kind: input, shape index: {}]   ;;  %s341_s3 = inlined_call_operand.<no memory space> [shape: f32[1,1], index: 3, kind: input, shape index: {}]   ;;  %s342_s4 = inlined_call_operand.vmem [shape: f32[2,97], index: 4, kind: input, shape index: {}]   ;;  %s343_s5 = inlined_call_operand.<no memory space> [shape: f32[], index: 5, kind: input, shape index: {}]   ;;  %s344_s6 = inlined_call_operand.vmem [shape: f32[1,128], index: 6, kind: output, shape index: {}]  }
   0x1   :  { %v11_v0 = vstv %s343_s5 }
   0x2   :  { %v88_v1 = vld [vmem:[%s338_s0] sm:$0xff]  ;;  %v24_v2 = vlaneseq  ;;  %v248_v3 = vmov 1   ;;  %v249_v4 = vmov 0   ;;  %v89_v7 = vld [vmem:[%s338_s0 + $0x8] sm:$0xff]  ;;  %v90_v11 = vld [vmem:[%s338_s0 + $0x10] sm:$0xff] }
   0x3   :  { %232 = vset.pattern.permute.xlu1 %v248_v3  ;;  %231 = vset.pattern.permute.xlu0 %v249_v4  ;;  %v23_v8 = vld [vmem:[%s342_s4] sm:$0x3]  ;;  %v91_v12 = vld [vmem:[%s338_s0 + $0x18] sm:$0xff]  ;;  %v149_v18 = vld [vmem:[%s339_s1 + $0x8] sm:$0xff] }
   0x4   :  { %121 = vperm.xlu1 %232, %v88_v1   ;;  %94 = vperm.xlu0 %231, %v88_v1   ;;  %v291_v5 = vshrl.u32 %v24_v2, 7  ;;  %v30_v6 = vand.u32 127, %v24_v2  ;;  %v148_v15 = vld [vmem:[%s339_s1] sm:$0xff]  ;;  %v150_v20 = vld [vmem:[%s339_s1 + $0x10] sm:$0xff]  ;;  %v151_v21 = vld [vmem:[%s339_s1 + $0x18] sm:$0xff] }
   0x5   :  { %v180_v23 = vld [vmem:[%s340_s2] sm:$0xff]  ;;  %v181_v24 = vld [vmem:[%s340_s2 + $0x8] sm:$0xff]  ;;  %v182_v25 = vld [vmem:[%s340_s2 + $0x10] sm:$0xff] }
   0x6   :  { %vm27_vm0 = vcmp.lt.s32.totalorder %v291_v5, 2  ;;  %vm32_vm1 = vcmp.lt.s32.totalorder %v30_v6, 97  ;;  %v183_v26 = vld [vmem:[%s340_s2 + $0x18] sm:$0xff]  ;;  %v114_v56 = vsub.s32 0, %v291_v5 }
   0x7   :  { %v28_v9 = vsel %vm27_vm0, %v23_v8, %v11_v0 }
   0x8   :  { %125 = vperm.xlu1 %232, %v89_v7   ;;  %99 = vperm.xlu0 %231, %v89_v7   ;;  %v33_v10 = vsel %vm32_vm1, %v28_v9, %v11_v0 }
   0x9   :  { %36 = vst [vmem:[#allocation8] sm:$0x3] %v33_v10 }
   0xc   :  { %129 = vperm.xlu1 %232, %v90_v11   ;;  %104 = vperm.xlu0 %231, %v90_v11  }
  0x10   :  { %133 = vperm.xlu1 %232, %v91_v12   ;;  %109 = vperm.xlu0 %231, %v91_v12   ;;  %v37_v13 = vld [vmem:[#allocation8] sm:$0x1]  ;;  %v38_v14 = vld [vmem:[#allocation8 + $0x1] sm:$0x1] }
  0x11   :  { %v49_v16 = vand.u32 2147483647, %v37_v13  ;;  %v50_v17 = vand.u32 2147483647, %v38_v14  ;;  %vm82_vm4 = vcmp.lt.f32.partialorder %v37_v13, 0.0  ;;  %vm85_vm5 = vcmp.lt.f32.partialorder %v38_v14, 0.0 }
  0x12   :  { %v39_v58 = vmul.f32 %v37_v13, %v37_v13  ;;  %v40_v59 = vmul.f32 %v38_v14, %v38_v14 }
  0x13   :  { %v52_v19 = vmax.f32 %v50_v17, %v49_v16  ;;  %vm79_vm2 = vcmp.gt.f32.partialorder %v50_v17, %v49_v16  ;;  %v51_v32 = vmin.f32 %v50_v17, %v49_v16 }
  0x14   :  { %233 = vset.pattern.permute.xlu1 %v249_v4  ;;  %154 = vperm.xlu0 %231, %v148_v15   ;;  %v41_v62 = vadd.f32 %v40_v59, %v39_v58 }
  0x15   :  { %159 = vperm.xlu1 %233, %v149_v18   ;;  %vm53_vm3 = vcmp.eq.f32.partialorder %v52_v19, 0.0 }
  0x16   :  { %v54_v22 = vsel %vm53_vm3, 1.0, %v52_v19  ;;  %vm44_vm6 = vcmp.eq.f32.partialorder %v41_v62, inf  ;;  %v47_v1 = vand.u32 2147483648, %v41_v62  ;;  %vm46_vm7 = vcmp.eq.f32.partialorder %v41_v62, 0.0 }
  0x17   :  { %234 = vrcp.f32 %v54_v22 }
  0x18   :  { %164 = vperm.xlu0 %231, %v150_v20   ;;  %236 = vrsqrt.f32 %v41_v62 }
  0x19   :  { %169 = vperm.xlu1 %233, %v151_v21  }
  0x1c   :  { %186 = vperm.xlu0 %231, %v180_v23  }
  0x1d   :  { %191 = vperm.xlu1 %233, %v181_v24  }
  0x20   :  { %196 = vperm.xlu0 %231, %v182_v25  }
  0x21   :  { %201 = vperm.xlu1 %233, %v183_v26  }
  0x24   :  { %v235_v27 = vpop.eup %234 }
  0x25   :  { %v56_v28 = vmul.f32 %v235_v27, %v54_v22  ;;  %v237_v63 = vpop.eup %236 }
  0x26   :  { %v43_v0 = vmul.f32 %v237_v63, %v41_v62 }
  0x27   :  { %v57_v29 = vsub.f32 2.0, %v56_v28 }
  0x28   :  { %v45_v2 = vsel %vm44_vm6, %v41_v62, %v43_v0 }
  0x29   :  { %v58_v30 = vmul.f32 %v235_v27, %v57_v29  ;;  %v48_v3 = vsel %vm46_vm7, %v47_v1, %v45_v2 }
  0x2a   :  { %v115_v4 = vrot.slane %v48_v3, %v114_v56 }
  0x2b   :  { %v59_v31 = vmul.f32 %v58_v30, %v54_v22 }
  0x2d   :  { %v60_v33 = vsub.f32 2.0, %v59_v31 }
  0x2f   :  { %v61_v34 = vmul.f32 %v60_v33, %v58_v30 }
  0x31   :  { %v62_v35 = vmul.f32 %v61_v34, %v51_v32 }
  0x33   :  { %v63_v36 = vmul.f32 %v62_v35, %v62_v35 }
  0x35   :  { %v64_v37 = vmul.f32 -0.00501873, %v63_v36 }
  0x37   :  { %v65_v38 = vadd.f32 0.025324445, %v64_v37 }
  0x39   :  { %v66_v39 = vmul.f32 %v65_v38, %v63_v36 }
  0x3b   :  { %v67_v40 = vadd.f32 -0.060865726, %v66_v39 }
  0x3d   :  { %v68_v41 = vmul.f32 %v67_v40, %v63_v36 }
  0x3f   :  { %v69_v42 = vadd.f32 0.1000169, %v68_v41 }
  0x41   :  { %v70_v43 = vmul.f32 %v69_v42, %v63_v36 }
  0x43   :  { %v71_v44 = vadd.f32 -0.14047669, %v70_v43 }
  0x45   :  { %v72_v45 = vmul.f32 %v71_v44, %v63_v36 }
  0x47   :  { %v73_v46 = vadd.f32 0.19974008, %v72_v45 }
  0x49   :  { %v74_v47 = vmul.f32 %v73_v46, %v63_v36 }
  0x4b   :  { %v75_v48 = vadd.f32 -0.33332232, %v74_v47 }
  0x4d   :  { %v76_v49 = vmul.f32 %v75_v48, %v63_v36 }
  0x4f   :  { %v77_v50 = vadd.f32 0.99999994, %v76_v49 }
  0x51   :  { %v78_v51 = vmul.f32 %v77_v50, %v62_v35 }
  0x53   :  { %v80_v52 = vsub.f32 1.5707964, %v78_v51 }
  0x55   :  { %v81_v53 = vsel %vm79_vm2, %v80_v52, %v78_v51 }
  0x56   :  { %v83_v54 = vsub.f32 3.1415927, %v81_v53 }
  0x58   :  { %v84_v55 = vsel %vm82_vm4, %v83_v54, %v81_v53  ;;  %v218_v53 = vstv %s341_s3 }
  0x59   :  { %v86_v57 = vsub.f32 0.0, %v84_v55 }
  0x5b   :  { %v87_v60 = vsel %vm85_vm5, %v86_v57, %v84_v55 }
  0x5c   :  { %v139_v61 = vrot.slane %v87_v60, %v114_v56 }
  0x7f   :  { %v122_v6 = vpop.permute.xlu1 %121  ;;  %v95_v7 = vpop.permute.xlu0 %94 }
  0x80   :  { %v140_v8 = vmul.f32 %v139_v61, %v122_v6  ;;  %v116_v9 = vmul.f32 %v115_v4, %v95_v7 }
  0x82   :  { %v144_v5 = vadd.f32 %v140_v8, %v116_v9 }
  0x83   :  { %v126_v10 = vpop.permute.xlu1 %125  ;;  %v100_v11 = vpop.permute.xlu0 %99 }
  0x84   :  { %v141_v12 = vmul.f32 %v139_v61, %v126_v10  ;;  %v117_v13 = vmul.f32 %v115_v4, %v100_v11 }
  0x86   :  { %v145_v14 = vadd.f32 %v141_v12, %v117_v13 }
  0x87   :  { %v130_v15 = vpop.permute.xlu1 %129  ;;  %v105_v16 = vpop.permute.xlu0 %104 }
  0x88   :  { %v142_v17 = vmul.f32 %v139_v61, %v130_v15  ;;  %v118_v18 = vmul.f32 %v115_v4, %v105_v16 }
  0x8a   :  { %v146_v19 = vadd.f32 %v142_v17, %v118_v18 }
  0x8b   :  { %v134_v20 = vpop.permute.xlu1 %133  ;;  %v110_v21 = vpop.permute.xlu0 %109 }
  0x8c   :  { %v143_v22 = vmul.f32 %v139_v61, %v134_v20  ;;  %v119_v23 = vmul.f32 %v115_v4, %v110_v21 }
  0x8e   :  { %v147_v24 = vadd.f32 %v143_v22, %v119_v23 }
  0x8f   :  { %v155_v25 = vpop.permute.xlu0 %154 }
  0x90   :  { %v172_v26 = vadd.f32 %v155_v25, %v144_v5  ;;  %v160_v27 = vpop.permute.xlu1 %159 }
  0x91   :  { %v173_v28 = vadd.f32 %v160_v27, %v145_v14 }
  0x92   :  { %238 = vtanh.f32 %v172_v26 }
  0x93   :  { %240 = vtanh.f32 %v173_v28  ;;  %v165_v29 = vpop.permute.xlu0 %164 }
  0x94   :  { %v174_v30 = vadd.f32 %v165_v29, %v146_v19  ;;  %v170_v31 = vpop.permute.xlu1 %169 }
  0x95   :  { %v175_v32 = vadd.f32 %v170_v31, %v147_v24 }
  0x96   :  { %242 = vtanh.f32 %v174_v30 }
  0x97   :  { %244 = vtanh.f32 %v175_v32  ;;  %v187_v33 = vpop.permute.xlu0 %186 }
  0x98   :  { %v192_v34 = vpop.permute.xlu1 %191 }
  0x9b   :  { %v197_v41 = vpop.permute.xlu0 %196 }
  0x9c   :  { %v202_v44 = vpop.permute.xlu1 %201 }
  0x9f   :  { %v239_v35 = vpop.eup %238 }
  0xa0   :  { %v241_v36 = vpop.eup %240  ;;  %v204_v37 = vmul.f32 %v239_v35, %v187_v33 }
  0xa1   :  { %v205_v38 = vmul.f32 %v241_v36, %v192_v34 }
  0xa3   :  { %v243_v39 = vpop.eup %242  ;;  %v208_v40 = vadd.f32 %v205_v38, %v204_v37 }
  0xa4   :  { %v245_v42 = vpop.eup %244  ;;  %v206_v43 = vmul.f32 %v243_v39, %v197_v41 }
  0xa5   :  { %v207_v45 = vmul.f32 %v245_v42, %v202_v44 }
  0xa6   :  { %v209_v46 = vadd.f32 %v208_v40, %v206_v43 }
  0xa8   :  { %v210_v47 = vadd.f32 %v209_v46, %v207_v45 }
  0xaa   :  { %v211_v48 = vrot.slane %v210_v47, 4 }
  0xac   :  { %v212_v49 = vadd.f32 %v211_v48, %v210_v47 }
  0xae   :  { %v213_v50 = vrot.slane %v212_v49, 2 }
  0xb0   :  { %v214_v51 = vadd.f32 %v213_v50, %v212_v49 }
  0xb2   :  { %v215_v52 = vrot.slane %v214_v51, 1 }
  0xb4   :  { %v216_v54 = vadd.f32 %v215_v52, %v214_v51 }
  0xb6   :  { %v219_v55 = vadd.f32 %v218_v53, %v216_v54 }
  0xb8   :  { %v220_v56 = vmul.f32 0.5, %v219_v55 }
  0xba   :  { %246 = vtanh.f32 %v220_v56 }
  0xc7   :  { %v247_v57 = vpop.eup %246 }
  0xc8   :  { %v222_v58 = vadd.f32 1.0, %v247_v57 }
  0xca   :  { %v223_v59 = vmul.f32 0.5, %v222_v58 }
  0xcc   :  { %224 = vst [vmem:[%s344_s6] sm:$0x1] %v223_v59 }

</bundles_post_ra>
